<compile_context>
chip_gen: v5e
topology: v5e:2x2
jax: 0.10.0
libtpu: 0.0.40
codegen_flags: <defaults>
</compile_context>

<pallas_src>
import jax
import jax.numpy as jnp
from jax.experimental import pallas as pl
from jax.experimental.pallas import tpu as pltpu

_LANE = 128
_SUBLANE = 8
# ~4 MiB per input tile in f32 (8192 rows x 128 lanes).  Double-buffered
# input + output => ~16 MiB of VMEM, safe on all generations once
# vmem_limit_bytes is raised explicitly.
_TARGET_TILE_BYTES = 4 * 1024 * 1024
_MIN_GRID = 4  # keep >=4 blocks on medium/large inputs so v7x megacore shards


def _round_up(x, m):
    return ((x + m - 1) // m) * m


def _lorenzian_kernel(coef_ref, x_ref, o_ref):
    # coef_ref: SMEM (4,) f32 = [A, B, c, x0] with A = a*b^2, B = b^2 folded
    # in the wrapper, so the hot loop is sub/mul/add + one EUP reciprocal.
    A = coef_ref[0]
    B = coef_ref[1]
    c = coef_ref[2]
    x0 = coef_ref[3]

    # f32 compute: no-op cast for f32 inputs, and required for correctness on
    # v5e (no bf16 VPU/EUP).  The op is HBM-bound so this costs nothing.
    x = x_ref[...].astype(jnp.float32)
    d = x - x0
    # a / (1 + ((x - x0)/b)^2) == (a*b^2) / (b^2 + (x - x0)^2)
    # Exact reciprocal (approx=False) is effectively free while memory-bound
    # and matches the PyTorch reference tightly.
    y = A * pl.reciprocal(B + d * d, approx=False) + c
    o_ref[...] = y.astype(o_ref.dtype)


def _choose_block_rows(rows, itemsize):
    """Row tile: multiple of 8, <= rows, ~_TARGET_TILE_BYTES per tile, and a
    grid of >= _MIN_GRID blocks for anything above 512 rows (v7x megacore)."""
    target = max(
        _SUBLANE,
        (_TARGET_TILE_BYTES // (_LANE * max(itemsize, 1))) // _SUBLANE * _SUBLANE,
    )
    br = min(target, max(_SUBLANE, (rows // _SUBLANE) * _SUBLANE))
    while rows > 512 and br > _SUBLANE and pl.cdiv(rows, br) < _MIN_GRID:
        br = max(_SUBLANE, ((br // 2) // _SUBLANE) * _SUBLANE)
    return br


def lorenzian_forward(coefficients, X):
    """coefficients: (4,) = [a, b, c, x0]; X: any float array.

    Returns a * 1/(1 + ((X - x0)/b)**2) + c with the same shape/dtype as X.
    """
    a = coefficients[0].astype(jnp.float32)
    b = coefficients[1].astype(jnp.float32)
    c = coefficients[2].astype(jnp.float32)
    x0 = coefficients[3].astype(jnp.float32)
    b2 = b * b
    # Fold the divide out of the hot loop: A/(B + d^2) with A=a*b^2, B=b^2
    # (numerically safer than 1/b^2 and one fewer vmul per element).
    kcoef = jnp.stack([a * b2, b2, c, x0])

    orig_shape = X.shape
    orig_dtype = X.dtype
    itemsize = jnp.dtype(orig_dtype).itemsize
    total = X.size

    # Pad only to a lane multiple (and to at least one sublane of rows).  For
    # the common case total % 128 == 0 this adds zero extra HBM traffic;
    # ragged last blocks are handled by Pallas edge masking (safe: pure
    # elementwise compute, masked store).
    padded_total = _round_up(max(total, 1), _LANE)
    rows = padded_total // _LANE
    if rows < _SUBLANE:
        rows = _SUBLANE
        padded_total = rows * _LANE

    flat = X.reshape(-1)
    if padded_total != total:
        flat = jnp.pad(flat, (0, padded_total - total))
    x2d = flat.reshape(rows, _LANE)

    block_rows = _choose_block_rows(rows, itemsize)
    grid = (pl.cdiv(rows, block_rows),)

    tile_bytes = block_rows * _LANE * itemsize
    # 2x double-buffered input + 2x output + headroom; capped well under
    # v7x's 64 MiB physical VMEM per TensorCore.
    vmem_limit = int(min(max(4 * tile_bytes + (4 << 20), 32 << 20), 48 << 20))

    cost = pl.CostEstimate(
        flops=6 * total,
        transcendentals=total,
        bytes_accessed=2 * total * itemsize,
    )

    out = pl.pallas_call(
        _lorenzian_kernel,
        out_shape=jax.ShapeDtypeStruct((rows, _LANE), orig_dtype),
        grid_spec=pltpu.PrefetchScalarGridSpec(
            num_scalar_prefetch=0,
            grid=grid,
            in_specs=[
                # coefficients: tiny vector kept whole in SMEM (read as scalars)
                pl.BlockSpec(memory_space=pltpu.MemorySpace.SMEM),
                # X tile: (block_rows, 128) per grid step, lane-dense
                pl.BlockSpec((block_rows, _LANE), lambda i: (i, 0)),
            ],
            out_specs=pl.BlockSpec((block_rows, _LANE), lambda i: (i, 0)),
        ),
        compiler_params=pltpu.CompilerParams(
            dimension_semantics=("parallel",),
            vmem_limit_bytes=vmem_limit,
        ),
        cost_estimate=cost,
    )(kcoef, x2d)

    out_flat = out.reshape(-1)
    if padded_total != total:
        out_flat = out_flat[:total]
    return out_flat.reshape(orig_shape)


def lorenzian_reference(coefficients, X):
    a, b, c, x0 = coefficients
    return a * 1.0 / (1.0 + ((X - x0) / b) ** 2) + c


if __name__ == "__main__":
    key = jax.random.PRNGKey(0)
    k_coef, k_x1, k_x2, k_x3 = jax.random.split(key, 4)

    # Deterministic "parameter init": Uniform(0, 0.1) sample of shape (4,),
    # mirroring torch.distributions.Uniform(0, 0.1).sample((4,)).
    coefficients = jax.random.uniform(
        k_coef, (4,), dtype=jnp.float32, minval=0.0, maxval=0.1
    )
    # Keep b (the divisor) away from ~0 for a numerically sane demo.
    coefficients = coefficients.at[1].add(0.05)

    # 1) Small NCHW input, lane-aligned fast path (no padding, no slicing).
    X1 = jax.random.normal(k_x1, (2, 4, 16, 16), dtype=jnp.float32)
    y1 = jax.block_until_ready(lorenzian_forward(coefficients, X1))
    assert y1.shape == X1.shape and y1.dtype == X1.dtype
    assert jnp.allclose(y1, lorenzian_reference(coefficients, X1),
                        rtol=1e-5, atol=1e-6)

    # 2) Non-lane-multiple input exercises the (tiny) pad path.
    X2 = jax.random.normal(k_x2, (3, 5, 7), dtype=jnp.float32)
    y2 = jax.block_until_ready(lorenzian_forward(coefficients, X2))
    assert y2.shape == X2.shape and y2.dtype == X2.dtype
    assert jnp.allclose(y2, lorenzian_reference(coefficients, X2),
                        rtol=1e-5, atol=1e-6)

    # 3) Lane-aligned but non-block-multiple input exercises the ragged
    #    last-block path (masked edge store).
    X3 = jax.random.normal(k_x3, (2, 4, 16, 17), dtype=jnp.float32)
    y3 = jax.block_until_ready(lorenzian_forward(coefficients, X3))
    assert y3.shape == X3.shape and y3.dtype == X3.dtype
    assert jnp.allclose(y3, lorenzian_reference(coefficients, X3),
                        rtol=1e-5, atol=1e-6)

    print("KERNEL_OK")
</pallas_src>

<mosaic_0001>
module attributes {stable_mosaic.version = 11 : i64} {
  func.func @_lorenzian_kernel(%arg0: i32, %arg1: memref<4xf32, #tpu.memory_space<smem>>, %arg2: memref<16x128xf32, #tpu.memory_space<vmem>>, %arg3: memref<16x128xf32, #tpu.memory_space<vmem>>) attributes {dimension_semantics = [#tpu.dimension_semantics<parallel>], iteration_bounds = array<i64: 1>, scalar_prefetch = 0 : i64, scratch_operands = 0 : i64, tpu.core_type = #tpu.core_type<tc>, window_params = [{transform_indices = @transform_0, window_bounds = array<i64: 4>}, {transform_indices = @transform_1, window_bounds = array<i64: 16, 128>}, {transform_indices = @transform_2, window_bounds = array<i64: 16, 128>}]} {
    %c0 = arith.constant 0 : index
    %0 = memref.load %arg1[%c0] : memref<4xf32, #tpu.memory_space<smem>>
    %c1 = arith.constant 1 : index
    %1 = memref.load %arg1[%c1] : memref<4xf32, #tpu.memory_space<smem>>
    %c2 = arith.constant 2 : index
    %2 = memref.load %arg1[%c2] : memref<4xf32, #tpu.memory_space<smem>>
    %c3 = arith.constant 3 : index
    %3 = memref.load %arg1[%c3] : memref<4xf32, #tpu.memory_space<smem>>
    %c0_0 = arith.constant 0 : index
    %c0_1 = arith.constant 0 : index
    %4 = vector.load %arg2[%c0_0, %c0_1] : memref<16x128xf32, #tpu.memory_space<vmem>>, vector<16x128xf32>
    %5 = vector.broadcast %3 : f32 to vector<16x128xf32>
    %6 = arith.subf %4, %5 : vector<16x128xf32>
    %7 = arith.mulf %6, %6 : vector<16x128xf32>
    %8 = vector.broadcast %1 : f32 to vector<16x128xf32>
    %9 = arith.addf %8, %7 : vector<16x128xf32>
    %10 = tpu.reciprocal %9 : vector<16x128xf32> -> vector<16x128xf32>
    %11 = vector.broadcast %0 : f32 to vector<16x128xf32>
    %12 = arith.mulf %11, %10 : vector<16x128xf32>
    %13 = vector.broadcast %2 : f32 to vector<16x128xf32>
    %14 = arith.addf %12, %13 : vector<16x128xf32>
    %c0_2 = arith.constant 0 : index
    %c0_3 = arith.constant 0 : index
    %15 = vector.load %arg3[%c0_2, %c0_3] : memref<16x128xf32, #tpu.memory_space<vmem>>, vector<16x128xf32>
    tpu.vector_store %arg3[%c0_2, %c0_3], %14 {strides = array<i32>} : memref<16x128xf32, #tpu.memory_space<vmem>>, vector<16x128xf32>,
    return
  }
  func.func @transform_0(%arg0: i32) -> i32 {
    %c0_i32 = arith.constant 0 : i32
    %c0_i32_0 = arith.constant 0 : i32
    return %c0_i32 : i32
  }
  func.func @transform_1(%arg0: i32) -> (i32, i32) {
    %c0_i32 = arith.constant 0 : i32
    %c0_i32_0 = arith.constant 0 : i32
    return %arg0, %c0_i32 : i32, i32
  }
  func.func @transform_2(%arg0: i32) -> (i32, i32) {
    %c0_i32 = arith.constant 0 : i32
    %c0_i32_0 = arith.constant 0 : i32
    return %arg0, %c0_i32 : i32, i32
  }
}

</mosaic_0001>

<bundles_post_ra>
// kernel: tpu_custom_call.1
= control target key start
LH: loop header
LB: loop body
LE: loop exit
PB: predicated region body
PF: predicated region fallthrough
CT: control target
= control target key end

     0   :  { %7 = vsyncpa [#allocation5], 0  ;;  %s230_s0 = inlined_call_operand.hbm [shape: f32[4], index: 0, kind: input, shape index: {}]   ;;  %s231_s1 = inlined_call_operand.hbm [shape: f32[16,128], index: 1, kind: input, shape index: {}]   ;;  %s232_s2 = inlined_call_operand.hbm [shape: f32[16,128], index: 2, kind: output, shape index: {}]  }
   0x1   :  { %8 = vsyncpa [#allocation3], 0 }
   0x2   :  { %9 = vsyncpa [#allocation4], 0  ;;  %s15_s11 = sshll.u32 %s230_s0, 4  ;;  %s23_s14 = sshll.u32 %s231_s1, 4  ;;  %s16_s11 = int_to_ptr.hbm [resolvable:$true] %s15_s11  ;;  %s24_s14 = int_to_ptr.hbm [resolvable:$true] %s23_s14 }
   0x3   :  { %s189_s15 = smov [#allocation2]   ;;  %s190_s16 = smov [#allocation6]  }
   0x4   :  { %18 = dma.hbm_to_smem %s16_s11, 16, %s189_s15, [#allocation5]  }
   0x5   :  { %s25_s17 = sshll.u32 %s190_s16, 4  ;;  %s191_s18 = smov 128   ;;  %s26_s17 = int_to_ptr.vmem [resolvable:$true] %s25_s17 }
   0x6   :  { %s192_s19 = smov 8  }
   0x7   :  { %31 = dma.hbm_to_vmem [thread:$0]  %s24_s14, 256, %s26_s17, [#allocation3], %s191_s18, %s191_s18, %s192_s19  }
   0x8   :  { %183 = dma.done.wait [#allocation5], 16  }
   0x9   :  { %184 = vsyncadd [#allocation5], 4294967280 }
   0xa   :  { %185 = dma.done.wait [#allocation3], 256  }
   0xb   :  { %186 = vsyncadd [#allocation3], 4294967040 }
   0xc   :  { %40 = sfence }
   0xd   :  { %s111_s0 = sld [smem:[#allocation2 + $0x1]]  ;;  %v45_v0 = vld [vmem:[#allocation6] sm:$0xff]  ;;  %v46_v1 = vld [vmem:[#allocation6 + $0x8] sm:$0xff]  ;;  %s193_s22 = smov [#allocation7]  }
   0xe   :  { %s113_s20 = sld [smem:[#allocation2 + $0x3]]  ;;  %s95_s23 = sshll.u32 %s193_s22, 4  ;;  %s96_s23 = int_to_ptr.vmem [resolvable:$true] %s95_s23 }
   0xf   :  { %s218_s1 = sld [smem:[#allocation2]]  ;;  %s97_s26 = sshll.u32 %s232_s2, 4  ;;  %s98_s26 = int_to_ptr.hbm [resolvable:$true] %s97_s26 }
  0x10   :  { %s220_s21 = sld [smem:[#allocation2 + $0x2]] }
  0x13   :  { %v52_v5 = vstv %s111_s0 }
  0x14   :  { %v47_v2 = vstv %s113_s20 }
  0x15   :  { %v48_v3 = vsub.f32 %v45_v0, %v47_v2  ;;  %v49_v4 = vsub.f32 %v46_v1, %v47_v2  ;;  %v83_v25 = vstv %s218_s1 }
  0x16   :  { %v86_v29 = vstv %s220_s21 }
  0x17   :  { %v50_v6 = vmul.f32 %v48_v3, %v48_v3  ;;  %v51_v7 = vmul.f32 %v49_v4, %v49_v4 }
  0x19   :  { %v53_v8 = vadd.f32 %v52_v5, %v50_v6  ;;  %v54_v9 = vadd.f32 %v52_v5, %v51_v7 }
  0x1b   :  { %119 = vrcp.f32 %v53_v8  ;;  %vm60_vm0 = vweird.f32 %v53_v8  ;;  %v66_v13 = vand.u32 2147483648, %v53_v8  ;;  %v64_v16 = vand.u32 2147483647, %v53_v8 }
  0x1c   :  { %121 = vrcp.f32 %v54_v9  ;;  %v80_v17 = vand.u32 2147483648, %v54_v9  ;;  %vm74_vm2 = vweird.f32 %v54_v9  ;;  %v78_v19 = vand.u32 2147483647, %v54_v9 }
  0x1d   :  { %v67_v21 = vor.u32 1.1754944e-38, %v66_v13  ;;  %vm65_vm5 = vcmp.eq.f32.partialorder %v64_v16, 8.507059e+37 }
  0x1e   :  { %v81_v24 = vor.u32 1.1754944e-38, %v80_v17  ;;  %vm79_vm7 = vcmp.eq.f32.partialorder %v78_v19, 8.507059e+37 }
  0x21   :  { %v120_v10 = vpop.eup %119 }
  0x22   :  { %v122_v11 = vpop.eup %121  ;;  %v56_v12 = vmul.f32 %v120_v10, %v53_v8  ;;  %vm61_vm1 = vweird.f32 %v120_v10 }
  0x23   :  { %v70_v14 = vmul.f32 %v122_v11, %v54_v9  ;;  %vm75_vm3 = vweird.f32 %v122_v11  ;;  %vm62_vm4 = vmor %vm60_vm0, %vm61_vm1 }
  0x24   :  { %v57_v15 = vsub.f32 1.0, %v56_v12  ;;  %vm76_vm6 = vmor %vm74_vm2, %vm75_vm3 }
  0x25   :  { %v71_v18 = vsub.f32 1.0, %v70_v14 }
  0x26   :  { %v58_v20 = vmul.f32 %v120_v10, %v57_v15 }
  0x27   :  { %v72_v22 = vmul.f32 %v122_v11, %v71_v18 }
  0x28   :  { %v59_v23 = vadd.f32 %v120_v10, %v58_v20 }
  0x29   :  { %v73_v26 = vadd.f32 %v122_v11, %v72_v22 }
  0x2a   :  { %v63_v27 = vsel %vm62_vm4, %v120_v10, %v59_v23 }
  0x2b   :  { %v68_v28 = vsel %vm65_vm5, %v67_v21, %v63_v27  ;;  %v77_v30 = vsel %vm76_vm6, %v122_v11, %v73_v26 }
  0x2c   :  { %v84_v31 = vmul.f32 %v83_v25, %v68_v28  ;;  %v82_v32 = vsel %vm79_vm7, %v81_v24, %v77_v30 }
  0x2d   :  { %v85_v33 = vmul.f32 %v83_v25, %v82_v32 }
  0x2e   :  { %v87_v34 = vadd.f32 %v86_v29, %v84_v31 }
  0x2f   :  { %v88_v35 = vadd.f32 %v86_v29, %v85_v33 }
  0x30   :  { %89 = vst [vmem:[#allocation7] sm:$0xff] %v87_v34 }
  0x31   :  { %90 = vst [vmem:[#allocation7 + $0x8] sm:$0xff] %v88_v35 }
  0x32   :  { %103 = dma.vmem_to_hbm [thread:$0]  %s96_s23, 256, %s98_s26, [#allocation4], %s191_s18, %s191_s18, %s192_s19  }
  0x33   :  { %187 = dma.done.wait [#allocation4], 256  }
  0x34   :  { %188 = vsyncadd [#allocation4], 4294967040 }
  0x35   :  { %108 = vsyncpa [#allocation3], 1 }
  0x36   :  { %109 = vsyncpa [#allocation4], 1 }
  0x37   :  { %110 = vsyncpa [#allocation5], 1 }

</bundles_post_ra>
